<compile_context>
chip_gen: v7x
topology: tpu7x:2x2x1
jax: 0.10.0
libtpu: 0.0.40
codegen_flags: <defaults>
</compile_context>

<pallas_src>
import jax
import jax.numpy as jnp
from jax.experimental import pallas as pl
from jax.experimental.pallas import tpu as pltpu

LANE = 128
MIB = 1024 * 1024


def _round_up(v, m):
    return ((v + m - 1) // m) * m


def _pad2(m, rows, cols):
    out = jnp.zeros((rows, cols), m.dtype)
    return out.at[: m.shape[0], : m.shape[1]].set(m)


def _pick_tile(n, target):
    """Largest multiple of LANE <= target that divides n (n is a LANE mult)."""
    t = min(target, n)
    while n % t != 0:
        t -= LANE
    return t


# ----------------------------------------------------------------------------
# Kernel 1: one GCNConv layer (bias=False) fused with ReLU, tiled reduction.
#   out = relu( (A_hat @ x) @ W ),  A_hat/x/W streamed in bf16, f32 acc.
# grid = (N_pad // TM, N_pad // TK); when x fits VMEM, TK == N_pad so the
# reduction axis has a single step and x is resident (fetched once).
# ----------------------------------------------------------------------------
def gcn_layer_kernel(a_ref, x_ref, w_ref, o_ref, acc_ref):
    k = pl.program_id(1)

    @pl.when(k == 0)
    def _():
        acc_ref[...] = jnp.zeros_like(acc_ref)

    # bf16 x bf16 -> f32 accumulate on the MXU.
    acc_ref[...] += jnp.dot(a_ref[...], x_ref[...],
                            preferred_element_type=jnp.float32)

    @pl.when(k == pl.num_programs(1) - 1)
    def _():
        # Epilogue weight matmul in bf16 (single MXU pass); f32 accumulation.
        h = jnp.dot(acc_ref[...].astype(jnp.bfloat16), w_ref[...],
                    preferred_element_type=jnp.float32)
        o_ref[...] = jnp.maximum(h, 0.0).astype(o_ref.dtype)


def gcn_layer(a_bf16, x_bf16, w_bf16, *, tm_target=512, tk_target=512,
              x_resident_bytes=4 * MIB):
    n_pad = a_bf16.shape[0]
    f_pad = x_bf16.shape[1]
    h_pad = w_bf16.shape[1]

    tm = _pick_tile(n_pad, tm_target)
    # Keep x fully resident (fetched once) whenever it comfortably fits VMEM;
    # otherwise stream 512-deep contraction tiles.
    if n_pad * f_pad * 2 <= x_resident_bytes:
        tk = n_pad
    else:
        tk = _pick_tile(n_pad, tk_target)

    grid = (n_pad // tm, n_pad // tk)

    flops = 2 * n_pad * n_pad * f_pad + 2 * n_pad * f_pad * h_pad
    x_streams = 1 if tk == n_pad else (n_pad // tm)
    bytes_accessed = (a_bf16.size * 2 + x_streams * x_bf16.size * 2
                      + w_bf16.size * 2 + n_pad * h_pad * 2)

    # Double-buffered inputs/outputs + f32 accumulator; cap well under the
    # v7x 64 MiB (32 MiB scoped) VMEM budget.
    footprint = (2 * tm * tk * 2 + 2 * tk * f_pad * 2 + 2 * f_pad * h_pad * 2
                 + 2 * tm * h_pad * 2 + tm * f_pad * 4)
    vmem_limit = int(min(32 * MIB, max(8 * MIB, 2 * footprint)))

    return pl.pallas_call(
        gcn_layer_kernel,
        out_shape=jax.ShapeDtypeStruct((n_pad, h_pad), jnp.bfloat16),
        grid_spec=pltpu.PrefetchScalarGridSpec(
            num_scalar_prefetch=0,
            grid=grid,
            in_specs=[
                pl.BlockSpec((tm, tk), lambda i, k: (i, k)),        # A_hat
                pl.BlockSpec((tk, f_pad), lambda i, k: (k, 0)),     # x (resident if tk==n_pad)
                pl.BlockSpec((f_pad, h_pad), lambda i, k: (0, 0)),  # W (resident)
            ],
            out_specs=pl.BlockSpec((tm, h_pad), lambda i, k: (i, 0)),
            scratch_shapes=[pltpu.VMEM((tm, f_pad), jnp.float32)],
        ),
        compiler_params=pltpu.CompilerParams(
            dimension_semantics=("parallel", "arbitrary"),
            vmem_limit_bytes=vmem_limit),
        cost_estimate=pl.CostEstimate(
            flops=int(flops), transcendentals=0,
            bytes_accessed=int(bytes_accessed)),
    )(a_bf16, x_bf16, w_bf16)


# ----------------------------------------------------------------------------
# Kernel 2: fused global_mean_pool + MLP head + log_softmax / sigmoid.
#   pooled = P @ x              (P, x fully resident; single grid step)
#   h      = relu(pooled @ W1' + b1')   (BatchNorm folded into W1'/b1')
#   last   = h @ W2 + b2                (dropout is eval-mode identity)
# Head math kept in f32; sigmoid computed exactly (runs once, externally
# returned output).
# ----------------------------------------------------------------------------
def head_kernel(p_ref, x_ref, w1_ref, b1_ref, w2_ref, b2_ref,
                log_ref, sig_ref, last_ref):
    pooled = jnp.dot(p_ref[...], x_ref[...].astype(jnp.float32),
                     preferred_element_type=jnp.float32)
    h = jnp.dot(pooled, w1_ref[...],
                preferred_element_type=jnp.float32) + b1_ref[...]
    h = jnp.maximum(h, 0.0)            # BN folded; dropout = identity (eval)
    last = jnp.dot(h, w2_ref[...],
                   preferred_element_type=jnp.float32) + b2_ref[...]
    last_ref[...] = last
    # numerically stable log_softmax over the last axis
    m = jnp.max(last, axis=-1, keepdims=True)
    s = last - m
    lse = jnp.log(jnp.sum(jnp.exp(s), axis=-1, keepdims=True))
    log_ref[...] = s - lse
    sig_ref[...] = 1.0 / (1.0 + jnp.exp(-last))   # exact sigmoid


def head(p, x, w1, b1, w2, b2):
    g, n_pad = p.shape
    h_pad = x.shape[1]
    c = w2.shape[1]
    flops = 2 * g * n_pad * h_pad + 2 * g * h_pad * h_pad + 2 * g * h_pad * c
    bytes_accessed = (p.size * 4 + x.size * 2
                      + (w1.size + b1.size + w2.size + b2.size + 3 * g * c) * 4)
    out_shape = tuple(jax.ShapeDtypeStruct((g, c), jnp.float32)
                      for _ in range(3))
    return pl.pallas_call(
        head_kernel,
        out_shape=out_shape,
        grid_spec=pltpu.PrefetchScalarGridSpec(
            num_scalar_prefetch=0,
            grid=(1,),
            in_specs=[
                pl.BlockSpec((g, n_pad), lambda i: (0, 0)),      # P (resident)
                pl.BlockSpec((n_pad, h_pad), lambda i: (0, 0)),  # x (resident)
                pl.BlockSpec((h_pad, h_pad), lambda i: (0, 0)),  # W1'
                pl.BlockSpec((1, h_pad), lambda i: (0, 0)),      # b1'
                pl.BlockSpec((h_pad, c), lambda i: (0, 0)),      # W2
                pl.BlockSpec((1, c), lambda i: (0, 0)),          # b2
            ],
            out_specs=tuple(pl.BlockSpec((g, c), lambda i: (0, 0))
                            for _ in range(3)),
        ),
        compiler_params=pltpu.CompilerParams(
            dimension_semantics=("arbitrary",),
            vmem_limit_bytes=16 * MIB),
        cost_estimate=pl.CostEstimate(
            flops=int(flops), transcendentals=int(4 * g * c),
            bytes_accessed=int(bytes_accessed)),
    )(p, x, w1, b1, w2, b2)


# ----------------------------------------------------------------------------
# Graph operators (host-side, dense), parameter init, forward passes.
# ----------------------------------------------------------------------------
def build_gcn_adjacency(edge_index, num_nodes):
    """A_hat = D^-1/2 (A + I) D^-1/2 with A[dst, src] = 1 per directed edge
    (duplicate edges add, matching PyG scatter_add of unit edge weights)."""
    src, dst = edge_index[0], edge_index[1]
    a = jnp.zeros((num_nodes, num_nodes), jnp.float32)
    a = a.at[dst, src].add(1.0)
    a = a + jnp.eye(num_nodes, dtype=jnp.float32)          # self-loops
    deg = a.sum(axis=1)
    dinv = jax.lax.rsqrt(jnp.maximum(deg, 1e-12))
    return a * dinv[:, None] * dinv[None, :]


def build_pool(batch, num_graphs, num_cols):
    n = batch.shape[0]
    p = jnp.zeros((num_graphs, num_cols), jnp.float32)
    p = p.at[batch, jnp.arange(n)].set(1.0)
    cnt = jnp.maximum(p.sum(axis=1, keepdims=True), 1.0)
    return p / cnt


def init_params(key, in_channels, hidden_channels, out_channels, num_layers):
    params = {"layers": [], "mlp": None}
    keys = jax.random.split(key, num_layers + 4)
    k = 0
    c_in = in_channels
    for _ in range(num_layers):
        s = 1.0 / jnp.sqrt(jnp.float32(c_in))
        w = jax.random.uniform(keys[k], (c_in, hidden_channels),
                               jnp.float32, -s, s); k += 1
        params["layers"].append(w)                         # GCNConv bias=False
        c_in = hidden_channels
    s1 = 1.0 / jnp.sqrt(jnp.float32(hidden_channels))
    w1 = jax.random.uniform(keys[k], (hidden_channels, hidden_channels),
                            jnp.float32, -s1, s1); k += 1
    b1 = jax.random.uniform(keys[k], (1, hidden_channels),
                            jnp.float32, -s1, s1); k += 1
    gamma = jnp.ones((1, hidden_channels), jnp.float32)
    beta = jnp.zeros((1, hidden_channels), jnp.float32)
    mu = jnp.zeros((1, hidden_channels), jnp.float32)
    var = jnp.ones((1, hidden_channels), jnp.float32)
    w2 = jax.random.uniform(keys[k], (hidden_channels, out_channels),
                            jnp.float32, -s1, s1); k += 1
    b2 = jnp.zeros((1, out_channels), jnp.float32)
    params["mlp"] = (w1, b1, gamma, beta, mu, var, w2, b2)
    return params


def gcn_forward_pallas(params, x, edge_index, edge_weight, batch, num_graphs):
    del edge_weight  # forward passes edge_weight=None; unused, as in PyTorch
    n, f0 = x.shape
    n_pad = _round_up(n, LANE)

    a = build_gcn_adjacency(edge_index, n)
    a_pad = _pad2(a, n_pad, n_pad).astype(jnp.bfloat16)      # bf16 N^2 stream

    # Stream x in bf16 end-to-end (first layer pre-cast; later layers emit bf16).
    x_p = _pad2(x, n_pad, _round_up(f0, LANE)).astype(jnp.bfloat16)
    for w in params["layers"]:
        f_in, h = w.shape
        w_p = _pad2(w, _round_up(f_in, LANE),
                    _round_up(h, LANE)).astype(jnp.bfloat16)
        x_p = gcn_layer(a_pad, x_p, w_p)                     # GCNConv + ReLU

    # Fold eval-mode BatchNorm1d into W1/b1 (running stats are fixed).
    w1, b1, gamma, beta, mu, var, w2, b2 = params["mlp"]
    scale = gamma * jax.lax.rsqrt(var + 1e-5)
    w1f = w1 * scale
    b1f = (b1 - mu) * scale + beta
    # TODO(synk): dropout is eval-mode identity (no RNG mask at inference).

    h_pad = x_p.shape[1]
    w1_p = _pad2(w1f, h_pad, h_pad)
    b1_p = _pad2(b1f, 1, h_pad)
    w2_p = _pad2(w2, h_pad, w2.shape[1])

    p = build_pool(batch, num_graphs, n_pad)
    x_log, x_sig, last = head(p, x_p, w1_p, b1_p, w2_p, b2)
    return x_log, x_sig, last


def gcn_forward_ref(params, x, edge_index, batch, num_graphs):
    """Pure-jnp reference (f32 everywhere) for a structural correctness check."""
    n = x.shape[0]
    a = build_gcn_adjacency(edge_index, n)
    h = x
    for w in params["layers"]:
        h = jnp.maximum(a @ h @ w, 0.0)
    p = build_pool(batch, num_graphs, n)
    pooled = p @ h
    w1, b1, gamma, beta, mu, var, w2, b2 = params["mlp"]
    z = pooled @ w1 + b1
    z = (z - mu) * jax.lax.rsqrt(var + 1e-5) * gamma + beta
    z = jnp.maximum(z, 0.0)
    last = z @ w2 + b2
    return jax.nn.log_softmax(last, -1), jax.nn.sigmoid(last), last


if __name__ == "__main__":
    key = jax.random.PRNGKey(0)

    # 2 graphs x 96 nodes (N=192 -> padded 256), in=8, hidden=32, out=4,
    # 2 GCN layers.
    num_graphs = 2
    nodes_per_graph = 96
    num_nodes = num_graphs * nodes_per_graph
    in_channels = 8
    hidden_channels = 32
    out_channels = 4
    num_layers = 2

    k_x, k_p = jax.random.split(key)
    x = jax.random.normal(k_x, (num_nodes, in_channels), jnp.float32)

    # bidirectional ring inside each graph
    src, dst = [], []
    for g in range(num_graphs):
        base = g * nodes_per_graph
        for i in range(nodes_per_graph):
            a_i = base + i
            b_i = base + (i + 1) % nodes_per_graph
            src += [a_i, b_i]
            dst += [b_i, a_i]
    edge_index = jnp.array([src, dst], dtype=jnp.int32)
    edge_weight = jnp.ones((edge_index.shape[1],), jnp.float32)   # unused
    batch = jnp.repeat(jnp.arange(num_graphs, dtype=jnp.int32), nodes_per_graph)

    params = init_params(k_p, in_channels, hidden_channels, out_channels,
                         num_layers)

    x_log, x_sig, last = gcn_forward_pallas(
        params, x, edge_index, edge_weight, batch, num_graphs)
    jax.block_until_ready((x_log, x_sig, last))

    # structural / numerical checks
    assert x_log.shape == (num_graphs, out_channels)
    assert x_sig.shape == (num_graphs, out_channels)
    assert last.shape == (num_graphs, out_channels)
    assert bool(jnp.isfinite(last).all())
    assert jnp.allclose(jnp.exp(x_log).sum(-1), 1.0, atol=1e-4)

    log_ref, sig_ref, last_ref = gcn_forward_ref(
        params, x, edge_index, batch, num_graphs)
    # bf16 A_hat / x streams -> loose absolute tolerance vs f32 reference
    assert float(jnp.max(jnp.abs(last - last_ref))) < 0.1
    assert float(jnp.max(jnp.abs(x_log - log_ref))) < 0.1
    assert float(jnp.max(jnp.abs(x_sig - sig_ref))) < 0.05

    print("KERNEL_OK")
</pallas_src>

<mosaic_0001>
module attributes {stable_mosaic.version = 11 : i64} {
  func.func @gcn_layer_kernel(%arg0: i32, %arg1: i32, %arg2: memref<256x256xbf16, #tpu.memory_space<vmem>>, %arg3: memref<256x128xbf16, #tpu.memory_space<vmem>>, %arg4: memref<128x128xbf16, #tpu.memory_space<vmem>>, %arg5: memref<256x128xbf16, #tpu.memory_space<vmem>>, %arg6: memref<256x128xf32, #tpu.memory_space<vmem>>) attributes {dimension_semantics = [#tpu.dimension_semantics<parallel>, #tpu.dimension_semantics<arbitrary>], iteration_bounds = array<i64: 1, 1>, scalar_prefetch = 0 : i64, scratch_operands = 1 : i64, tpu.core_type = #tpu.core_type<tc>, window_params = [{transform_indices = @transform_0, window_bounds = array<i64: 256, 256>}, {transform_indices = @transform_1, window_bounds = array<i64: 256, 128>}, {pipeline_mode = #tpu.pipeline_mode<synchronous>, transform_indices = @transform_2, window_bounds = array<i64: 128, 128>}, {transform_indices = @transform_3, window_bounds = array<i64: 256, 128>}]} {
    %c0_i32 = arith.constant 0 : i32
    %0 = arith.cmpi eq, %arg1, %c0_i32 : i32
    %1 = arith.extui %0 : i1 to i32
    %c0_i32_0 = arith.constant 0 : i32
    %2 = arith.cmpi ne, %1, %c0_i32_0 : i32
    scf.if %2 {
      %cst_10 = arith.constant 0.000000e+00 : f32
      %12 = vector.broadcast %cst_10 : f32 to vector<256x128xf32>
      %c0_11 = arith.constant 0 : index
      %c0_12 = arith.constant 0 : index
      %13 = vector.load %arg6[%c0_11, %c0_12] : memref<256x128xf32, #tpu.memory_space<vmem>>, vector<256x128xf32>
      tpu.vector_store %arg6[%c0_11, %c0_12], %12 {strides = array<i32>} : memref<256x128xf32, #tpu.memory_space<vmem>>, vector<256x128xf32>,
    } else {
    }
    %c0 = arith.constant 0 : index
    %c0_1 = arith.constant 0 : index
    %3 = vector.load %arg6[%c0, %c0_1] : memref<256x128xf32, #tpu.memory_space<vmem>>, vector<256x128xf32>
    %c0_2 = arith.constant 0 : index
    %c0_3 = arith.constant 0 : index
    %4 = vector.load %arg2[%c0_2, %c0_3] : memref<256x256xbf16, #tpu.memory_space<vmem>>, vector<256x256xbf16>
    %c0_4 = arith.constant 0 : index
    %c0_5 = arith.constant 0 : index
    %5 = vector.load %arg3[%c0_4, %c0_5] : memref<256x128xbf16, #tpu.memory_space<vmem>>, vector<256x128xbf16>
    %cst = arith.constant dense<0.000000e+00> : vector<256x128xf32>
    %6 = tpu.matmul %4, %5, %cst {dimension_numbers = #tpu.dot_dimension_numbers<[1], [0], [0], [1], [0, 0, 1, 1], [], []>} : vector<256x256xbf16>, vector<256x128xbf16>, vector<256x128xf32> -> vector<256x128xf32>
    %7 = arith.addf %3, %6 : vector<256x128xf32>
    %c0_6 = arith.constant 0 : index
    %c0_7 = arith.constant 0 : index
    %8 = vector.load %arg6[%c0_6, %c0_7] : memref<256x128xf32, #tpu.memory_space<vmem>>, vector<256x128xf32>
    tpu.vector_store %arg6[%c0_6, %c0_7], %7 {strides = array<i32>} : memref<256x128xf32, #tpu.memory_space<vmem>>, vector<256x128xf32>,
    %c0_i32_8 = arith.constant 0 : i32
    %9 = arith.cmpi eq, %arg1, %c0_i32_8 : i32
    %10 = arith.extui %9 : i1 to i32
    %c0_i32_9 = arith.constant 0 : i32
    %11 = arith.cmpi ne, %10, %c0_i32_9 : i32
    scf.if %11 {
      %c0_10 = arith.constant 0 : index
      %c0_11 = arith.constant 0 : index
      %12 = vector.load %arg6[%c0_10, %c0_11] : memref<256x128xf32, #tpu.memory_space<vmem>>, vector<256x128xf32>
      %13 = arith.truncf %12 : vector<256x128xf32> to vector<256x128xbf16>
      %c0_12 = arith.constant 0 : index
      %c0_13 = arith.constant 0 : index
      %14 = vector.load %arg4[%c0_12, %c0_13] : memref<128x128xbf16, #tpu.memory_space<vmem>>, vector<128x128xbf16>
      %cst_14 = arith.constant dense<0.000000e+00> : vector<256x128xf32>
      %15 = tpu.matmul %13, %14, %cst_14 {dimension_numbers = #tpu.dot_dimension_numbers<[1], [0], [0], [1], [0, 0, 1, 1], [], []>} : vector<256x128xbf16>, vector<128x128xbf16>, vector<256x128xf32> -> vector<256x128xf32>
      %cst_15 = arith.constant 0.000000e+00 : f32
      %16 = vector.broadcast %cst_15 : f32 to vector<256x128xf32>
      %17 = arith.maximumf %15, %16 : vector<256x128xf32>
      %18 = arith.truncf %17 : vector<256x128xf32> to vector<256x128xbf16>
      %c0_16 = arith.constant 0 : index
      %c0_17 = arith.constant 0 : index
      %19 = vector.load %arg5[%c0_16, %c0_17] : memref<256x128xbf16, #tpu.memory_space<vmem>>, vector<256x128xbf16>
      tpu.vector_store %arg5[%c0_16, %c0_17], %18 {strides = array<i32>} : memref<256x128xbf16, #tpu.memory_space<vmem>>, vector<256x128xbf16>,
    } else {
    }
    return
  }
  func.func @transform_0(%arg0: i32, %arg1: i32) -> (i32, i32) {
    %c0_i32 = arith.constant 0 : i32
    return %arg0, %arg1 : i32, i32
  }
  func.func @transform_1(%arg0: i32, %arg1: i32) -> (i32, i32) {
    %c0_i32 = arith.constant 0 : i32
    %c0_i32_0 = arith.constant 0 : i32
    return %arg1, %c0_i32 : i32, i32
  }
  func.func @transform_2(%arg0: i32, %arg1: i32) -> (i32, i32) {
    %c0_i32 = arith.constant 0 : i32
    %c0_i32_0 = arith.constant 0 : i32
    %c0_i32_1 = arith.constant 0 : i32
    return %c0_i32, %c0_i32_0 : i32, i32
  }
  func.func @transform_3(%arg0: i32, %arg1: i32) -> (i32, i32) {
    %c0_i32 = arith.constant 0 : i32
    %c0_i32_0 = arith.constant 0 : i32
    return %arg0, %c0_i32 : i32, i32
  }
}

</mosaic_0001>

<bundles_post_ra>
// kernel: tpu_custom_call.1
= control target key start
LH: loop header
LB: loop body
LE: loop exit
PB: predicated region body
PF: predicated region fallthrough
CT: control target
= control target key end

     0   :  { %8 = vsyncpa [#allocation4], 0  ;;  %s1866_s0 = inlined_call_operand.hbm [shape: bf16[256,256], index: 0, kind: input, shape index: {}]   ;;  %s1867_s1 = inlined_call_operand.hbm [shape: bf16[256,128], index: 1, kind: input, shape index: {}]   ;;  %s1868_s2 = inlined_call_operand.hbm [shape: bf16[128,128], index: 2, kind: input, shape index: {}]   ;;  %s1869_s3 = inlined_call_operand.hbm [shape: bf16[256,128], index: 3, kind: output, shape index: {}]  }
   0x1   :  { %9 = vsyncpa [#allocation7], 0 }
   0x2   :  { %10 = vsyncpa [#allocation5], 0  ;;  %s1745_s12 = smov [#allocation6]   ;;  %s1651_s16 = scalar_lea.hbm %s1867_s1, 2048 }
   0x3   :  { %s28_s13 = sshll.u32 %s1745_s12, 4  ;;  %p1652_p0 = scmp.ne.s32.totalorder %s1867_s1, %s1651_s16  ;;  %s29_s13 = int_to_ptr.vmem [resolvable:$true] %s28_s13 }
   0x4   :  { %p1655_p1 = scmp.lt.u32.totalorder %s1651_s16, %s1867_s1 }
   0x6   :  { %p1657_p2 = pnand %p1655_p1, %p1652_p0 }
   0x8   :  { %1660 = shalt.err (!%p1657_p2)
}
   0x9   :  { %s1661_s21 = scalar_lea.vmem %s29_s13, 2048  ;;  %p1666_p4 = scmp.lt.s32.totalorder %s29_s13, %s29_s13 }
   0xa   :  { %p1662_p3 = scmp.ne.s32.totalorder %s29_s13, %s1661_s21  ;;  %p1667_p5 = scmp.lt.s32.totalorder %s1661_s21, %s1661_s21 }
   0xc   :  { %p1668_p6 = por %p1667_p5, %p1666_p4 }
   0xe   :  { %p1669_p7 = pnand %p1668_p6, %p1662_p3 }
  0x10   :  { %1672 = shalt.err (!%p1669_p7)
}
  0x11   :  { %s1746_s22 = smov 64   ;;  %s1747_s23 = smov 4  }
  0x12   :  { %34 = dma.hbm_to_vmem [thread:$0]  %s1867_s1, 2048, %s29_s13, [#allocation7], %s1746_s22, %s1746_s22, %s1747_s23  }
  0x13   :  { %s1748_s26 = smov [#allocation3]   ;;  %s1673_s30 = scalar_lea.hbm %s1866_s0, 4096 }
  0x14   :  { %s16_s27 = sshll.u32 %s1748_s26, 4  ;;  %p1674_p8 = scmp.ne.s32.totalorder %s1866_s0, %s1673_s30  ;;  %s17_s27 = int_to_ptr.vmem [resolvable:$true] %s16_s27 }
  0x15   :  { %p1677_p9 = scmp.lt.u32.totalorder %s1673_s30, %s1866_s0 }
  0x17   :  { %p1679_p10 = pnand %p1677_p9, %p1674_p8 }
  0x19   :  { %1682 = shalt.err (!%p1679_p10)
}
  0x1a   :  { %s1683_s8 = scalar_lea.vmem %s17_s27, 4096  ;;  %p1688_p12 = scmp.lt.s32.totalorder %s17_s27, %s17_s27 }
  0x1b   :  { %p1684_p11 = scmp.ne.s32.totalorder %s17_s27, %s1683_s8  ;;  %p1689_p13 = scmp.lt.s32.totalorder %s1683_s8, %s1683_s8 }
  0x1d   :  { %p1690_p0 = por %p1689_p13, %p1688_p12 }
  0x1f   :  { %p1691_p1 = pnand %p1690_p0, %p1684_p11 }
  0x21   :  { %1694 = shalt.err (!%p1691_p1)
}
  0x22   :  { %s1749_s1 = smov 128   ;;  %s1750_s9 = smov 8  }
  0x23   :  { %22 = dma.hbm_to_vmem [thread:$0]  %s1866_s0, 4096, %s17_s27, [#allocation4], %s1749_s1, %s1749_s1, %s1750_s9  }
  0x24   :  { %s1751_s12 = smov [#allocation8]   ;;  %s1695_s16 = scalar_lea.hbm %s1868_s2, 1024 }
  0x25   :  { %s40_s13 = sshll.u32 %s1751_s12, 4  ;;  %p1696_p2 = scmp.ne.s32.totalorder %s1868_s2, %s1695_s16  ;;  %s41_s13 = int_to_ptr.vmem [resolvable:$true] %s40_s13 }
  0x26   :  { %p1699_p3 = scmp.lt.u32.totalorder %s1695_s16, %s1868_s2 }
  0x28   :  { %p1701_p4 = pnand %p1699_p3, %p1696_p2 }
  0x2a   :  { %1704 = shalt.err (!%p1701_p4)
}
  0x2b   :  { %s1705_s21 = scalar_lea.vmem %s41_s13, 1024  ;;  %p1710_p6 = scmp.lt.s32.totalorder %s41_s13, %s41_s13 }
  0x2c   :  { %p1706_p5 = scmp.ne.s32.totalorder %s41_s13, %s1705_s21  ;;  %p1711_p7 = scmp.lt.s32.totalorder %s1705_s21, %s1705_s21 }
  0x2e   :  { %p1712_p8 = por %p1711_p7, %p1710_p6 }
  0x30   :  { %p1713_p9 = pnand %p1712_p8, %p1706_p5 }
  0x32   :  { %1716 = shalt.err (!%p1713_p9)
}
  0x33   :  { %46 = dma.hbm_to_vmem [thread:$0]  %s1868_s2, 1024, %s41_s13, [#allocation7], %s1746_s22, %s1746_s22, %s1747_s23  }
  0x34   :  { %1739 = dma.done.wait [#allocation4], 4096  }
  0x35   :  { %1740 = vsyncadd [#allocation4], 4294963200 }
  0x36   :  { %1741 = dma.done.wait [#allocation7], 3072  }
  0x37   :  { %1742 = vsyncadd [#allocation7], 4294964224  ;;  %v1579_v0 = vld [vmem:[#allocation6 + $0x40] sm:$0xff]   ;;  %v1581_v2 = vld [vmem:[#allocation6 + $0x48] sm:$0xff]   ;;  %s1752_s2 = smov [#allocation9]  }
  0x38   :  { %v1580_v1 = vld [vmem:[#allocation6] sm:$0xff]   ;;  %1371 = vmatprep.subr.bf16.mxu0 %v1579_v0  ;;  %1555 = vmatprep.subr.bf16.mxu1 %v1579_v0  ;;  %v1582_v3 = vld [vmem:[#allocation6 + $0x8] sm:$0xff]   ;;  %v1583_v4 = vld [vmem:[#allocation6 + $0x50] sm:$0xff]   ;;  %s1143_s25 = sshll.u32 %s1752_s2, 4  ;;  %s1144_s25 = int_to_ptr.vmem [resolvable:$true] %s1143_s25 }
  0x39   :  { %1372 = vmatpush3.bf16.msra.mxu0 %v1580_v1  ;;  %1563 = vmatpush3.bf16.msra.mxu1 %v1580_v1  ;;  %v1584_v5 = vld [vmem:[#allocation6 + $0x10] sm:$0xff]   ;;  %v1585_v6 = vld [vmem:[#allocation6 + $0x58] sm:$0xff]   ;;  %v1587_v8 = vld [vmem:[#allocation6 + $0x60] sm:$0xff]   ;;  %s1717_s26 = scalar_lea.vmem %s1144_s25, 2048  ;;  %p1722_p11 = scmp.lt.s32.totalorder %s1144_s25, %s1144_s25 }
  0x3a   :  { %1373 = vmatprep.subr.bf16.mxu0 %v1581_v2  ;;  %1556 = vmatprep.subr.bf16.mxu1 %v1581_v2  ;;  %v1586_v7 = vld [vmem:[#allocation6 + $0x18] sm:$0xff]   ;;  %v1588_v9 = vld [vmem:[#allocation6 + $0x20] sm:$0xff]   ;;  %v1589_v10 = vld [vmem:[#allocation6 + $0x68] sm:$0xff]   ;;  %p1718_p10 = scmp.ne.s32.totalorder %s1144_s25, %s1717_s26  ;;  %p1723_p12 = scmp.lt.s32.totalorder %s1717_s26, %s1717_s26 }
  0x3b   :  { %v1597_v11 = vld [vmem:[#allocation3 + $0x4] ss:$8 sps:$4 sm:$0xff]   ;;  %v1591_v13 = vld [vmem:[#allocation6 + $0x70] sm:$0xff]   ;;  %v1593_v15 = vld [vmem:[#allocation6 + $0x78] sm:$0xff]  }
  0x3c   :  { %v1590_v12 = vld [vmem:[#allocation6 + $0x28] sm:$0xff]   ;;  %477 = vmatprep.mubr.bf16.mxu0 %v1597_v11  ;;  %v1592_v14 = vld [vmem:[#allocation6 + $0x30] sm:$0xff]   ;;  %v1594_v16 = vld [vmem:[#allocation6 + $0x38] sm:$0xff]   ;;  %p1724_p13 = por %p1723_p12, %p1722_p11 }
  0x3d   :  { %1374 = vmatpush3.bf16.msra.mxu0 %v1582_v3  ;;  %1564 = vmatpush3.bf16.msra.mxu1 %v1582_v3  ;;  %v1595_v17 = vld [vmem:[#allocation3] ss:$8 sps:$4 sm:$0xff]   ;;  %v1627_v18 = vld [vmem:[#allocation3 + $0xc4] ss:$8 sps:$4 sm:$0xff]   ;;  %v1598_v19 = vld [vmem:[#allocation3 + $0x14] ss:$8 sps:$4 sm:$0xff]  }
  0x3e   :  { %1375 = vmatprep.subr.bf16.mxu0 %v1583_v4  ;;  %1557 = vmatprep.subr.bf16.mxu1 %v1583_v4  ;;  %v1625_v20 = vld [vmem:[#allocation3 + $0xc0] ss:$8 sps:$4 sm:$0xff]   ;;  %v1631_v21 = vld [vmem:[#allocation3 + $0xd4] ss:$8 sps:$4 sm:$0xff]   ;;  %v1600_v22 = vld [vmem:[#allocation3 + $0x10] ss:$8 sps:$4 sm:$0xff]   ;;  %p1725_p0 = pnand %p1724_p13, %p1718_p10 }
  0x3f   :  { %573 = vmatprep.mubr.bf16.mxu1 %v1627_v18  ;;  %v1601_v23 = vld [vmem:[#allocation3 + $0x24] ss:$8 sps:$4 sm:$0xff]   ;;  %v1633_v24 = vld [vmem:[#allocation3 + $0xd0] ss:$8 sps:$4 sm:$0xff]   ;;  %v1603_v29 = vld [vmem:[#allocation3 + $0x20] ss:$8 sps:$4 sm:$0xff]  }
  0x40   :  { %v1643_v25 = vld [vmem:[#allocation8] sm:$0xff]   ;;  %v1644_v26 = vld [vmem:[#allocation8 + $0x8] sm:$0xff]   ;;  %v1645_v28 = vld [vmem:[#allocation8 + $0x10] sm:$0xff]  }
  0x41   :  { %1376 = vmatpush3.bf16.msra.mxu0 %v1584_v5  ;;  %1565 = vmatpush3.bf16.msra.mxu1 %v1584_v5  ;;  %v1637_v27 = vld [vmem:[#allocation3 + $0xe4] ss:$8 sps:$4 sm:$0xff]   ;;  %v1646_v30 = vld [vmem:[#allocation8 + $0x18] sm:$0xff]   ;;  %v1639_v32 = vld [vmem:[#allocation3 + $0xe0] ss:$8 sps:$4 sm:$0xff]  }
  0x42   :  { %1377 = vmatprep.subr.bf16.mxu0 %v1585_v6  ;;  %1558 = vmatprep.subr.bf16.mxu1 %v1585_v6  ;;  %v1604_v31 = vld [vmem:[#allocation3 + $0x34] ss:$8 sps:$4 sm:$0xff]   ;;  %v1606_v34 = vld [vmem:[#allocation3 + $0x30] ss:$8 sps:$4 sm:$0xff]   ;;  %v1607_v35 = vld [vmem:[#allocation3 + $0x44] ss:$8 sps:$4 sm:$0xff]  }
  0x43   :  { %v1640_v33 = vld [vmem:[#allocation3 + $0xf4] ss:$8 sps:$4 sm:$0xff]   ;;  %v1642_v36 = vld [vmem:[#allocation3 + $0xf0] ss:$8 sps:$4 sm:$0xff]   ;;  %v1609_v37 = vld [vmem:[#allocation3 + $0x40] ss:$8 sps:$4 sm:$0xff]  }
  0x44   :  { %v1610_v38 = vld [vmem:[#allocation3 + $0x54] ss:$8 sps:$4 sm:$0xff]   ;;  %v1612_v39 = vld [vmem:[#allocation3 + $0x50] ss:$8 sps:$4 sm:$0xff]   ;;  %v1613_v40 = vld [vmem:[#allocation3 + $0x64] ss:$8 sps:$4 sm:$0xff]  }
  0x45   :  { %1378 = vmatpush3.bf16.msra.mxu0 %v1586_v7  ;;  %1566 = vmatpush3.bf16.msra.mxu1 %v1586_v7  ;;  %v1615_v41 = vld [vmem:[#allocation3 + $0x60] ss:$8 sps:$4 sm:$0xff]   ;;  %v1616_v42 = vld [vmem:[#allocation3 + $0x74] ss:$8 sps:$4 sm:$0xff]   ;;  %v1618_v43 = vld [vmem:[#allocation3 + $0x70] ss:$8 sps:$4 sm:$0xff]  }
  0x46   :  { %1379 = vmatprep.subr.bf16.mxu0 %v1587_v8  ;;  %1559 = vmatprep.subr.bf16.mxu1 %v1587_v8  ;;  %v1619_v44 = vld [vmem:[#allocation3 + $0x84] ss:$8 sps:$4 sm:$0xff]   ;;  %v1621_v45 = vld [vmem:[#allocation3 + $0x80] ss:$8 sps:$4 sm:$0xff]   ;;  %v1622_v46 = vld [vmem:[#allocation3 + $0x94] ss:$8 sps:$4 sm:$0xff]  }
  0x47   :  { %v1624_v47 = vld [vmem:[#allocation3 + $0x90] ss:$8 sps:$4 sm:$0xff]   ;;  %v1628_v48 = vld [vmem:[#allocation3 + $0xa4] ss:$8 sps:$4 sm:$0xff]   ;;  %v1630_v49 = vld [vmem:[#allocation3 + $0xa0] ss:$8 sps:$4 sm:$0xff]  }
  0x48   :  { %v1634_v50 = vld [vmem:[#allocation3 + $0xb4] ss:$8 sps:$4 sm:$0xff]   ;;  %v1647_v51 = vld [vmem:[#allocation8 + $0x20] sm:$0xff]   ;;  %v1636_v52 = vld [vmem:[#allocation3 + $0xb0] ss:$8 sps:$4 sm:$0xff]  }
  0x49   :  { %1380 = vmatpush3.bf16.msra.mxu0 %v1588_v9  ;;  %1567 = vmatpush3.bf16.msra.mxu1 %v1588_v9  ;;  %v1648_v53 = vld [vmem:[#allocation8 + $0x28] sm:$0xff]   ;;  %v1649_v54 = vld [vmem:[#allocation8 + $0x30] sm:$0xff]   ;;  %v1650_v55 = vld [vmem:[#allocation8 + $0x38] sm:$0xff]  }
  0x4a   :  { %1381 = vmatprep.subr.bf16.mxu0 %v1589_v10  ;;  %1560 = vmatprep.subr.bf16.mxu1 %v1589_v10 }
  0x4d   :  { %1382 = vmatpush3.bf16.msra.mxu0 %v1590_v12  ;;  %1568 = vmatpush3.bf16.msra.mxu1 %v1590_v12 }
  0x4e   :  { %1383 = vmatprep.subr.bf16.mxu0 %v1591_v13  ;;  %1561 = vmatprep.subr.bf16.mxu1 %v1591_v13 }
  0x51   :  { %1384 = vmatpush3.bf16.msra.mxu0 %v1592_v14  ;;  %1569 = vmatpush3.bf16.msra.mxu1 %v1592_v14 }
  0x52   :  { %1385 = vmatprep.subr.bf16.mxu0 %v1593_v15  ;;  %1562 = vmatprep.subr.bf16.mxu1 %v1593_v15 }
  0x55   :  { %1386 = vmatpush3.bf16.msra.mxu0 %v1594_v16  ;;  %1570 = vmatpush3.bf16.msra.mxu1 %v1594_v16 }
  0x56   :  { %1507 = vmatprep.subr.bf16.mxu1 %v1643_v25 }
  0x58   :  { %478 = vmatmul.mubr.bf16.vlgmr.msra.gmra.mrb[0].mxu0 %v1595_v17  ;;  %574 = vmatmul.mubr.bf16.vlgmr.msra.gmra.mrb[0].mxu1 %v1625_v20 }
  0x59   :  { %485 = vmatprep.mubr.bf16.mxu0 %v1598_v19  ;;  %581 = vmatprep.mubr.bf16.mxu1 %v1631_v21 }
  0x5a   :  { %1508 = vmatpush3.bf16.msra.mxu1 %v1643_v25 }
  0x5b   :  { %1509 = vmatprep.subr.bf16.mxu1 %v1644_v26 }
  0x5e   :  { %1510 = vmatpush3.bf16.msra.mxu1 %v1644_v26 }
  0x5f   :  { %1511 = vmatprep.subr.bf16.mxu1 %v1645_v28 }
  0x60   :  { %486 = vmatmul.mubr.bf16.gmra.mrb[4].mxu0 %v1600_v22  ;;  %582 = vmatmul.mubr.bf16.gmra.mrb[4].mxu1 %v1633_v24 }
  0x61   :  { %493 = vmatprep.mubr.bf16.mxu0 %v1601_v23  ;;  %589 = vmatprep.mubr.bf16.mxu1 %v1637_v27 }
  0x62   :  { %1512 = vmatpush3.bf16.msra.mxu1 %v1645_v28 }
  0x63   :  { %1513 = vmatprep.subr.bf16.mxu1 %v1646_v30 }
  0x66   :  { %1514 = vmatpush3.bf16.msra.mxu1 %v1646_v30 }
  0x67   :  { %1515 = vmatprep.subr.bf16.mxu1 %v1647_v51 }
  0x68   :  { %494 = vmatmul.mubr.bf16.gmra.mrb[8].mxu0 %v1603_v29  ;;  %590 = vmatmul.mubr.bf16.gmra.mrb[8].mxu1 %v1639_v32 }
  0x69   :  { %501 = vmatprep.mubr.bf16.mxu0 %v1604_v31  ;;  %597 = vmatprep.mubr.bf16.mxu1 %v1640_v33 }
  0x6a   :  { %1516 = vmatpush3.bf16.msra.mxu1 %v1647_v51 }
  0x6b   :  { %1517 = vmatprep.subr.bf16.mxu1 %v1648_v53 }
  0x6e   :  { %1518 = vmatpush3.bf16.msra.mxu1 %v1648_v53 }
  0x6f   :  { %1519 = vmatprep.subr.bf16.mxu1 %v1649_v54 }
  0x70   :  { %502 = vmatmul.mubr.bf16.gmra.mrb[12].mxu0 %v1606_v34  ;;  %598 = vmatmul.mubr.bf16.gmra.mrb[12].mxu1 %v1642_v36 }
  0x71   :  { %509 = vmatprep.mubr.bf16.mxu0 %v1607_v35 }
  0x72   :  { %1520 = vmatpush3.bf16.msra.mxu1 %v1649_v54 }
  0x73   :  { %1521 = vmatprep.subr.bf16.mxu1 %v1650_v55 }
  0x76   :  { %1522 = vmatpush3.bf16.msra.mxu1 %v1650_v55 }
  0x78   :  { %510 = vmatmul.mubr.bf16.gmra.mrb[16].mxu0 %v1609_v37 }
  0x79   :  { %517 = vmatprep.mubr.bf16.mxu0 %v1610_v38 }
  0x80   :  { %518 = vmatmul.mubr.bf16.gmra.mrb[20].mxu0 %v1612_v39 }
  0x81   :  { %525 = vmatprep.mubr.bf16.mxu0 %v1613_v40 }
  0x88   :  { %526 = vmatmul.mubr.bf16.gmra.mrb[24].mxu0 %v1615_v41 }
  0x89   :  { %533 = vmatprep.mubr.bf16.mxu0 %v1616_v42 }
  0x90   :  { %534 = vmatmul.mubr.bf16.gmra.mrb[28].mxu0 %v1618_v43 }
  0x91   :  { %541 = vmatprep.mubr.bf16.mxu0 %v1619_v44 }
  0x98   :  { %542 = vmatmul.mubr.bf16.gmra.mrb[32].mxu0 %v1621_v45 }
  0x99   :  { %549 = vmatprep.mubr.bf16.mxu0 %v1622_v46 }
  0xa0   :  { %550 = vmatmul.mubr.bf16.gmra.mrb[36].mxu0 %v1624_v47 }
  0xa1   :  { %557 = vmatprep.mubr.bf16.mxu0 %v1628_v48 }
  0xa8   :  { %558 = vmatmul.mubr.bf16.gmra.mrb[40].mxu0 %v1630_v49 }
  0xa9   :  { %565 = vmatprep.mubr.bf16.mxu0 %v1634_v50 }
  0xb0   :  { %566 = vmatmul.mubr.bf16.gmra.mrb[44].mxu0 %v1636_v52 }
 0x12b   :  { %v1387_v56 = vpop.f32.mrb[0].mxu0  ;;  %v1459_v58 = vpop.f32.mrb[0].mxu1 }
 0x12c   :  { %v1388_v57 = vpop.f32.mrb[1].mxu0  ;;  %v1460_v61 = vpop.f32.mrb[1].mxu1 }
 0x12d   :  { %v1389_v59 = vadd.f32 %v1388_v57, %v1387_v56  ;;  %v1390_v60 = vpop.f32.mrb[2].mxu0  ;;  %v1815_v63 = vadd.f32 %v1460_v61, %v1459_v58  ;;  %v1462_v0 = vpop.f32.mrb[2].mxu1 }
 0x12e   :  { %v1391_v62 = vpop.f32.mrb[3].mxu0  ;;  %v1463_v2 = vpop.f32.mrb[3].mxu1 }
 0x12f   :  { %v1392_v1 = vadd.f32 %v1391_v62, %v1390_v60  ;;  %v1817_v3 = vadd.f32 %v1463_v2, %v1462_v0 }
 0x131   :  { %v705_v4 = vpack.c.bf16 %v1392_v1, %v1389_v59  ;;  %v717_v5 = vpack.c.bf16 %v1817_v3, %v1815_v63 }
 0x133   :  { %v1393_v6 = vpop.f32.mrb[4].mxu0  ;;  %1523 = vmatprep.mubr.bf16.mxu1 %v705_v4  ;;  %v1465_v8 = vpop.f32.mrb[4].mxu1 }
 0x134   :  { %v1394_v7 = vpop.f32.mrb[5].mxu0  ;;  %v1466_v11 = vpop.f32.mrb[5].mxu1 }
 0x135   :  { %v1395_v9 = vadd.f32 %v1394_v7, %v1393_v6  ;;  %v1396_v10 = vpop.f32.mrb[6].mxu0  ;;  %v1821_v13 = vadd.f32 %v1466_v11, %v1465_v8  ;;  %v1468_v14 = vpop.f32.mrb[6].mxu1 }
 0x136   :  { %v1397_v12 = vpop.f32.mrb[7].mxu0  ;;  %v1469_v16 = vpop.f32.mrb[7].mxu1 }
 0x137   :  { %v1398_v15 = vadd.f32 %v1397_v12, %v1396_v10  ;;  %v1823_v17 = vadd.f32 %v1469_v16, %v1468_v14 }
 0x139   :  { %v706_v18 = vpack.c.bf16 %v1398_v15, %v1395_v9  ;;  %v718_v19 = vpack.c.bf16 %v1823_v17, %v1821_v13 }
 0x13b   :  { %v1399_v20 = vpop.f32.mrb[8].mxu0  ;;  %1524 = vmatmul.mubr.bf16.vlgmr.msra.gmra.mrb[16].mxu1 %v706_v18  ;;  %v1471_v22 = vpop.f32.mrb[8].mxu1 }
 0x13c   :  { %v1400_v21 = vpop.f32.mrb[9].mxu0  ;;  %v1472_v25 = vpop.f32.mrb[9].mxu1 }
 0x13d   :  { %v1401_v23 = vadd.f32 %v1400_v21, %v1399_v20  ;;  %v1402_v24 = vpop.f32.mrb[10].mxu0  ;;  %v1827_v27 = vadd.f32 %v1472_v25, %v1471_v22  ;;  %v1474_v28 = vpop.f32.mrb[10].mxu1 }
 0x13e   :  { %v1403_v26 = vpop.f32.mrb[11].mxu0  ;;  %v1475_v30 = vpop.f32.mrb[11].mxu1 }
 0x13f   :  { %v1404_v29 = vadd.f32 %v1403_v26, %v1402_v24  ;;  %v1829_v31 = vadd.f32 %v1475_v30, %v1474_v28 }
 0x141   :  { %v707_v32 = vpack.c.bf16 %v1404_v29, %v1401_v23  ;;  %v719_v33 = vpack.c.bf16 %v1829_v31, %v1827_v27 }
 0x143   :  { %v1405_v34 = vpop.f32.mrb[12].mxu0  ;;  %1527 = vmatprep.mubr.bf16.mxu1 %v707_v32  ;;  %v1477_v36 = vpop.f32.mrb[12].mxu1 }
 0x144   :  { %v1406_v35 = vpop.f32.mrb[13].mxu0  ;;  %v1478_v39 = vpop.f32.mrb[13].mxu1 }
 0x145   :  { %v1407_v37 = vadd.f32 %v1406_v35, %v1405_v34  ;;  %v1408_v38 = vpop.f32.mrb[14].mxu0  ;;  %v1833_v41 = vadd.f32 %v1478_v39, %v1477_v36  ;;  %v1480_v42 = vpop.f32.mrb[14].mxu1 }
 0x146   :  { %v1409_v40 = vpop.f32.mrb[15].mxu0  ;;  %v1481_v44 = vpop.f32.mrb[15].mxu1 }
 0x147   :  { %v1410_v43 = vadd.f32 %v1409_v40, %v1408_v38  ;;  %v1835_v45 = vadd.f32 %v1481_v44, %v1480_v42 }
 0x149   :  { %v708_v46 = vpack.c.bf16 %v1410_v43, %v1407_v37  ;;  %v720_v47 = vpack.c.bf16 %v1835_v45, %v1833_v41 }
 0x14b   :  { %v1411_v48 = vpop.f32.mrb[16].mxu0  ;;  %1528 = vmatmul.mubr.bf16.gmra.mrb[20].mxu1 %v708_v46 }
 0x14c   :  { %v1412_v49 = vpop.f32.mrb[17].mxu0 }
 0x14d   :  { %v1413_v50 = vadd.f32 %v1412_v49, %v1411_v48  ;;  %v1414_v51 = vpop.f32.mrb[18].mxu0 }
 0x14e   :  { %v1415_v52 = vpop.f32.mrb[19].mxu0 }
 0x14f   :  { %v1416_v53 = vadd.f32 %v1415_v52, %v1414_v51 }
 0x151   :  { %v709_v54 = vpack.c.bf16 %v1416_v53, %v1413_v50 }
 0x153   :  { %v1417_v55 = vpop.f32.mrb[20].mxu0  ;;  %1531 = vmatprep.mubr.bf16.mxu1 %v709_v54 }
 0x154   :  { %v1418_v56 = vpop.f32.mrb[21].mxu0 }
 0x155   :  { %v1419_v57 = vadd.f32 %v1418_v56, %v1417_v55  ;;  %v1420_v58 = vpop.f32.mrb[22].mxu0 }
 0x156   :  { %v1421_v59 = vpop.f32.mrb[23].mxu0 }
 0x157   :  { %v1422_v60 = vadd.f32 %v1421_v59, %v1420_v58 }
 0x159   :  { %v710_v61 = vpack.c.bf16 %v1422_v60, %v1419_v57 }
 0x15b   :  { %v1423_v62 = vpop.f32.mrb[24].mxu0  ;;  %1532 = vmatmul.mubr.bf16.gmra.mrb[24].mxu1 %v710_v61 }
 0x15c   :  { %v1424_v0 = vpop.f32.mrb[25].mxu0 }
 0x15d   :  { %v1425_v1 = vadd.f32 %v1424_v0, %v1423_v62  ;;  %v1426_v2 = vpop.f32.mrb[26].mxu0 }
 0x15e   :  { %v1427_v4 = vpop.f32.mrb[27].mxu0 }
 0x15f   :  { %v1428_v6 = vadd.f32 %v1427_v4, %v1426_v2 }
 0x161   :  { %v711_v7 = vpack.c.bf16 %v1428_v6, %v1425_v1 }
 0x163   :  { %v1429_v8 = vpop.f32.mrb[28].mxu0  ;;  %1535 = vmatprep.mubr.bf16.mxu1 %v711_v7 }
 0x164   :  { %v1430_v9 = vpop.f32.mrb[29].mxu0 }
 0x165   :  { %v1431_v10 = vadd.f32 %v1430_v9, %v1429_v8  ;;  %v1432_v11 = vpop.f32.mrb[30].mxu0 }
 0x166   :  { %v1433_v12 = vpop.f32.mrb[31].mxu0 }
 0x167   :  { %v1434_v14 = vadd.f32 %v1433_v12, %v1432_v11 }
 0x169   :  { %v712_v15 = vpack.c.bf16 %v1434_v14, %v1431_v10 }
 0x16b   :  { %v1435_v16 = vpop.f32.mrb[32].mxu0  ;;  %1536 = vmatmul.mubr.bf16.gmra.mrb[28].mxu1 %v712_v15 }
 0x16c   :  { %v1436_v18 = vpop.f32.mrb[33].mxu0 }
 0x16d   :  { %v1437_v20 = vadd.f32 %v1436_v18, %v1435_v16  ;;  %v1438_v21 = vpop.f32.mrb[34].mxu0 }
 0x16e   :  { %v1439_v22 = vpop.f32.mrb[35].mxu0 }
 0x16f   :  { %v1440_v23 = vadd.f32 %v1439_v22, %v1438_v21 }
 0x171   :  { %v713_v24 = vpack.c.bf16 %v1440_v23, %v1437_v20 }
 0x173   :  { %v1441_v25 = vpop.f32.mrb[36].mxu0  ;;  %1539 = vmatprep.mubr.bf16.mxu1 %v713_v24 }
 0x174   :  { %v1442_v26 = vpop.f32.mrb[37].mxu0 }
 0x175   :  { %v1443_v28 = vadd.f32 %v1442_v26, %v1441_v25  ;;  %v1444_v29 = vpop.f32.mrb[38].mxu0 }
 0x176   :  { %v1445_v30 = vpop.f32.mrb[39].mxu0 }
 0x177   :  { %v1446_v32 = vadd.f32 %v1445_v30, %v1444_v29 }
 0x179   :  { %v714_v34 = vpack.c.bf16 %v1446_v32, %v1443_v28 }
 0x17b   :  { %v1447_v35 = vpop.f32.mrb[40].mxu0  ;;  %1540 = vmatmul.mubr.bf16.gmra.mrb[32].mxu1 %v714_v34 }
 0x17c   :  { %v1448_v36 = vpop.f32.mrb[41].mxu0 }
 0x17d   :  { %v1449_v37 = vadd.f32 %v1448_v36, %v1447_v35  ;;  %v1450_v38 = vpop.f32.mrb[42].mxu0 }
 0x17e   :  { %v1451_v39 = vpop.f32.mrb[43].mxu0 }
 0x17f   :  { %v1452_v40 = vadd.f32 %v1451_v39, %v1450_v38 }
 0x181   :  { %v715_v42 = vpack.c.bf16 %v1452_v40, %v1449_v37 }
 0x183   :  { %v1453_v43 = vpop.f32.mrb[44].mxu0  ;;  %1543 = vmatprep.mubr.bf16.mxu1 %v715_v42 }
 0x184   :  { %v1454_v44 = vpop.f32.mrb[45].mxu0 }
 0x185   :  { %v1455_v46 = vadd.f32 %v1454_v44, %v1453_v43  ;;  %v1456_v48 = vpop.f32.mrb[46].mxu0 }
 0x186   :  { %v1457_v49 = vpop.f32.mrb[47].mxu0 }
 0x187   :  { %v1458_v50 = vadd.f32 %v1457_v49, %v1456_v48 }
 0x189   :  { %v716_v51 = vpack.c.bf16 %v1458_v50, %v1455_v46 }
 0x18b   :  { %1544 = vmatmul.mubr.bf16.gmra.mrb[36].mxu1 %v716_v51 }
 0x18c   :  { %1547 = vmatprep.mubr.bf16.mxu1 %v717_v5 }
 0x193   :  { %1548 = vmatmul.mubr.bf16.gmra.mrb[40].mxu1 %v718_v19 }
 0x194   :  { %1551 = vmatprep.mubr.bf16.mxu1 %v719_v33 }
 0x19b   :  { %1552 = vmatmul.mubr.bf16.gmra.mrb[44].mxu1 %v720_v47 }
 0x20e   :  { %v1525_v52 = vpop.f32.mrb[16].mxu1 }
 0x20f   :  { %v819_v53 = vpop.f32.mrb[17].mxu1  ;;  %v948_v55 = vmax.f32 %v1525_v52, 0.0 }
 0x210   :  { %v1526_v54 = vpop.f32.mrb[18].mxu1  ;;  %v946_v63 = vmax.f32 %v819_v53, 0.0 }
 0x211   :  { %v949_v56 = vmax.f32 %v1526_v54, 0.0  ;;  %v822_v57 = vpop.f32.mrb[19].mxu1 }
 0x212   :  { %v947_v3 = vmax.f32 %v822_v57, 0.0 }
 0x213   :  { %v1284_v5 = vpack.c.bf16 %v949_v56, %v948_v55 }
 0x214   :  { %v1279_v58 = vpack.c.bf16 %v947_v3, %v946_v63 }
 0x215   :  { %1356 = vst [vmem:[#allocation9 + $0x8] sm:$0xff] %v1284_v5  }
 0x216   :  { %1280 = vst [vmem:[#allocation9] sm:$0xff] %v1279_v58  }
 0x21e   :  { %v1529_v13 = vpop.f32.mrb[20].mxu1 }
 0x21f   :  { %v835_v17 = vpop.f32.mrb[21].mxu1  ;;  %v952_v27 = vmax.f32 %v1529_v13, 0.0 }
 0x220   :  { %v1530_v19 = vpop.f32.mrb[22].mxu1  ;;  %v950_v41 = vmax.f32 %v835_v17, 0.0 }
 0x221   :  { %v953_v31 = vmax.f32 %v1530_v19, 0.0  ;;  %v838_v33 = vpop.f32.mrb[23].mxu1 }
 0x222   :  { %v951_v45 = vmax.f32 %v838_v33, 0.0 }
 0x223   :  { %v1294_v47 = vpack.c.bf16 %v953_v31, %v952_v27 }
 0x224   :  { %v1289_v59 = vpack.c.bf16 %v951_v45, %v950_v41 }
 0x225   :  { %1358 = vst [vmem:[#allocation9 + $0x18] sm:$0xff] %v1294_v47  }
 0x226   :  { %1357 = vst [vmem:[#allocation9 + $0x10] sm:$0xff] %v1289_v59  }
 0x22e   :  { %v1533_v60 = vpop.f32.mrb[24].mxu1 }
 0x22f   :  { %v851_v61 = vpop.f32.mrb[25].mxu1  ;;  %v956_v0 = vmax.f32 %v1533_v60, 0.0 }
 0x230   :  { %v1534_v62 = vpop.f32.mrb[26].mxu1  ;;  %v954_v4 = vmax.f32 %v851_v61, 0.0 }
 0x231   :  { %v957_v1 = vmax.f32 %v1534_v62, 0.0  ;;  %v854_v2 = vpop.f32.mrb[27].mxu1 }
 0x232   :  { %v955_v6 = vmax.f32 %v854_v2, 0.0 }
 0x233   :  { %v1304_v7 = vpack.c.bf16 %v957_v1, %v956_v0 }
 0x234   :  { %v1299_v8 = vpack.c.bf16 %v955_v6, %v954_v4 }
 0x235   :  { %1360 = vst [vmem:[#allocation9 + $0x28] sm:$0xff] %v1304_v7  }
 0x236   :  { %1359 = vst [vmem:[#allocation9 + $0x20] sm:$0xff] %v1299_v8  }
 0x23e   :  { %v1537_v9 = vpop.f32.mrb[28].mxu1 }
 0x23f   :  { %v867_v10 = vpop.f32.mrb[29].mxu1  ;;  %v960_v12 = vmax.f32 %v1537_v9, 0.0 }
 0x240   :  { %v1538_v11 = vpop.f32.mrb[30].mxu1  ;;  %v958_v16 = vmax.f32 %v867_v10, 0.0 }
 0x241   :  { %v961_v14 = vmax.f32 %v1538_v11, 0.0  ;;  %v870_v15 = vpop.f32.mrb[31].mxu1 }
 0x242   :  { %v959_v18 = vmax.f32 %v870_v15, 0.0 }
 0x243   :  { %v1314_v20 = vpack.c.bf16 %v961_v14, %v960_v12 }
 0x244   :  { %v1309_v21 = vpack.c.bf16 %v959_v18, %v958_v16 }
 0x245   :  { %1362 = vst [vmem:[#allocation9 + $0x38] sm:$0xff] %v1314_v20  }
 0x246   :  { %1361 = vst [vmem:[#allocation9 + $0x30] sm:$0xff] %v1309_v21  }
 0x24e   :  { %v1541_v22 = vpop.f32.mrb[32].mxu1 }
 0x24f   :  { %v883_v23 = vpop.f32.mrb[33].mxu1  ;;  %v964_v25 = vmax.f32 %v1541_v22, 0.0 }
 0x250   :  { %v1542_v24 = vpop.f32.mrb[34].mxu1  ;;  %v962_v29 = vmax.f32 %v883_v23, 0.0 }
 0x251   :  { %v965_v26 = vmax.f32 %v1542_v24, 0.0  ;;  %v886_v28 = vpop.f32.mrb[35].mxu1 }
 0x252   :  { %v963_v30 = vmax.f32 %v886_v28, 0.0 }
 0x253   :  { %v1324_v32 = vpack.c.bf16 %v965_v26, %v964_v25 }
 0x254   :  { %v1319_v34 = vpack.c.bf16 %v963_v30, %v962_v29 }
 0x255   :  { %1364 = vst [vmem:[#allocation9 + $0x48] sm:$0xff] %v1324_v32  }
 0x256   :  { %1363 = vst [vmem:[#allocation9 + $0x40] sm:$0xff] %v1319_v34  }
 0x25e   :  { %v1545_v35 = vpop.f32.mrb[36].mxu1 }
 0x25f   :  { %v899_v36 = vpop.f32.mrb[37].mxu1  ;;  %v968_v38 = vmax.f32 %v1545_v35, 0.0 }
 0x260   :  { %v1546_v37 = vpop.f32.mrb[38].mxu1  ;;  %v966_v42 = vmax.f32 %v899_v36, 0.0 }
 0x261   :  { %v969_v39 = vmax.f32 %v1546_v37, 0.0  ;;  %v902_v40 = vpop.f32.mrb[39].mxu1 }
 0x262   :  { %v967_v43 = vmax.f32 %v902_v40, 0.0 }
 0x263   :  { %v1334_v44 = vpack.c.bf16 %v969_v39, %v968_v38 }
 0x264   :  { %v1329_v46 = vpack.c.bf16 %v967_v43, %v966_v42 }
 0x265   :  { %1366 = vst [vmem:[#allocation9 + $0x58] sm:$0xff] %v1334_v44  }
 0x266   :  { %1365 = vst [vmem:[#allocation9 + $0x50] sm:$0xff] %v1329_v46   ;;  %v1549_v48 = vpop.f32.mrb[40].mxu1 }
 0x267   :  { %v915_v49 = vpop.f32.mrb[41].mxu1  ;;  %v972_v51 = vmax.f32 %v1549_v48, 0.0 }
 0x268   :  { %v1550_v50 = vpop.f32.mrb[42].mxu1  ;;  %v970_v54 = vmax.f32 %v915_v49, 0.0 }
 0x269   :  { %v973_v52 = vmax.f32 %v1550_v50, 0.0  ;;  %v918_v53 = vpop.f32.mrb[43].mxu1 }
 0x26a   :  { %v971_v55 = vmax.f32 %v918_v53, 0.0 }
 0x26b   :  { %v1344_v56 = vpack.c.bf16 %v973_v52, %v972_v51 }
 0x26c   :  { %v1339_v57 = vpack.c.bf16 %v971_v55, %v970_v54 }
 0x26d   :  { %1368 = vst [vmem:[#allocation9 + $0x68] sm:$0xff] %v1344_v56  }
 0x26e   :  { %1367 = vst [vmem:[#allocation9 + $0x60] sm:$0xff] %v1339_v57   ;;  %v1553_v63 = vpop.f32.mrb[44].mxu1 }
 0x26f   :  { %v931_v3 = vpop.f32.mrb[45].mxu1  ;;  %v976_v58 = vmax.f32 %v1553_v63, 0.0 }
 0x270   :  { %v1554_v5 = vpop.f32.mrb[46].mxu1  ;;  %v974_v19 = vmax.f32 %v931_v3, 0.0 }
 0x271   :  { %v977_v13 = vmax.f32 %v1554_v5, 0.0  ;;  %v934_v17 = vpop.f32.mrb[47].mxu1 }
 0x272   :  { %v975_v27 = vmax.f32 %v934_v17, 0.0 }
 0x273   :  { %v1354_v31 = vpack.c.bf16 %v977_v13, %v976_v58 }
 0x274   :  { %v1349_v33 = vpack.c.bf16 %v975_v27, %v974_v19 }
 0x275   :  { %1370 = vst [vmem:[#allocation9 + $0x78] sm:$0xff] %v1354_v31  }
 0x276   :  { %1369 = vst [vmem:[#allocation9 + $0x70] sm:$0xff] %v1349_v33  }
 0x277   :  { %1728 = shalt.err (!%p1725_p0)
}
 0x278   :  { %s1729_s29 = scalar_lea.hbm %s1869_s3, 2048 }
 0x279   :  { %p1730_p1 = scmp.ne.s32.totalorder %s1869_s3, %s1729_s29  ;;  %p1733_p2 = scmp.lt.u32.totalorder %s1729_s29, %s1869_s3 }
 0x27b   :  { %p1735_p3 = pnand %p1733_p2, %p1730_p1 }
 0x27d   :  { %1738 = shalt.err (!%p1735_p3)
}
 0x27e   :  { %1149 = dma.vmem_to_hbm [thread:$0]  %s1144_s25, 2048, %s1869_s3, [#allocation5], %s1746_s22, %s1746_s22, %s1747_s23  }
 0x27f   :  { %1743 = dma.done.wait [#allocation5], 2048  }
 0x280   :  { %1744 = vsyncadd [#allocation5], 4294965248 }
 0x281   :  { %1153 = vsyncpa [#allocation4], 1 }
 0x282   :  { %1154 = vsyncpa [#allocation7], 1 }
 0x283   :  { %1155 = vsyncpa [#allocation5], 1 }

</bundles_post_ra>
